<compile_context>
chip_gen: v5e
topology: v5e:2x2
jax: 0.10.0
libtpu: 0.0.40
codegen_flags: <defaults>
</compile_context>

<pallas_src>
import functools

import jax
import jax.numpy as jnp
from jax.experimental import pallas as pl
from jax.experimental.pallas import tpu as pltpu


def _round_up(x, m):
    return ((x + m - 1) // m) * m


def _pick_block(dim_p, target, quantum):
    """Largest divisor of dim_p that is a multiple of `quantum` and <= target.

    dim_p must already be a multiple of `quantum`.  Guarantees the grid covers
    dim_p exactly (no tail / block-multiple padding).
    """
    n_units = dim_p // quantum
    best = quantum
    for d in range(1, n_units + 1):
        if n_units % d == 0:
            blk = d * quantum
            if blk <= target:
                best = blk
    return best


def _temp_scale_matmul_kernel(temp_ref, x_ref, w_ref, b_ref, o_ref, *, block_k):
    """Accumulate one (TB, TK) x-tile @ (TK, NCp) W-slice into the resident
    output block; add bias at k==0, apply 1/temperature at the last k.

    temp_ref: (1,)         f32 SMEM  (temperature parameter)
    x_ref:    (TB, TK)     VMEM (bf16 or f32)
    w_ref:    (Dp, NCp)    VMEM if W is resident, else (TK, NCp)
    b_ref:    (1, NCp)     f32 VMEM (resident)
    o_ref:    (TB, NCp)    f32 VMEM; block index constant over k, so it is the
                           accumulator (resident across the reduction axis).
    """
    k = pl.program_id(1)

    @pl.when(k == 0)
    def _init():
        # Initialize the resident output block with the broadcast bias so the
        # finalize step only does the temperature scale.
        o_ref[...] = jnp.broadcast_to(b_ref[...], o_ref.shape)

    if w_ref.shape[0] == block_k:
        # Tiled W (or resident W with a single K step): use the whole tile.
        w_blk = w_ref[...]
    else:
        # Resident W: slice the current K chunk out of the VMEM-resident copy.
        start = pl.multiple_of(k * block_k, block_k)
        w_blk = w_ref[pl.ds(start, block_k), :]

    o_ref[...] += jnp.dot(x_ref[...], w_blk, preferred_element_type=jnp.float32)

    @pl.when(k == pl.num_programs(1) - 1)
    def _finalize():
        inv_t = 1.0 / temp_ref[0]          # one scalar divide per output tile
        o_ref[...] = o_ref[...] * inv_t


def model_with_temperature_forward(x_nchw, weight, bias, temperature, *,
                                   use_bf16=True, block_b=None, block_k=None,
                                   x_buffers=2, vmem_limit_bytes=None):
    """Forward pass: logits = flatten(x) @ W + b; return logits / temperature.

    x_nchw: (B, C, H, W); weight: (D, NC); bias: (NC,); temperature: scalar.
    """
    B = x_nchw.shape[0]
    D, NC = weight.shape

    in_dtype = jnp.bfloat16 if use_bf16 else jnp.float32
    itemsize = 2 if use_bf16 else 4

    # ---- shapes padded only to TPU (sublane, lane) granularity -------------
    Bp = _round_up(B, 8)
    Dp = _round_up(D, 128)
    NCp = _round_up(NC, 128)   # lane-dense output: unmasked vst, full MXU lanes

    # ---- tile selection: divisors of the rounded dims (no block padding) ---
    if block_b is None:
        block_b = _pick_block(Bp, min(512, Bp), 8)
        if Bp // block_b == 1 and Bp >= 16:
            # Prefer >=2 batch blocks so the "parallel" axis can use both
            # TensorCores on megacore parts (v7x).
            block_b = _pick_block(Bp, Bp // 2, 8)
    if block_k is None:
        block_k = _pick_block(Dp, min(4096, Dp), 128)
    assert Bp % block_b == 0 and Dp % block_k == 0
    n_b = Bp // block_b
    n_k = Dp // block_k

    # Keep W fully VMEM-resident when small; avoids re-streaming it per batch
    # tile (second-largest HBM stream otherwise).
    w_resident = (Dp * NCp * itemsize) <= (8 << 20)
    w_rows = Dp if w_resident else block_k

    # ---- host-side glue (no full padded copy of x in the common case) ------
    x2d = x_nchw.reshape(B, D).astype(in_dtype)
    if (B, D) == (Bp, Dp):
        x_in = x2d
    else:
        x_in = jnp.zeros((Bp, Dp), in_dtype).at[:B, :D].set(x2d)

    w_p = jnp.zeros((Dp, NCp), in_dtype).at[:D, :NC].set(weight.astype(in_dtype))
    b_p = jnp.zeros((1, NCp), jnp.float32).at[0, :NC].set(
        bias.astype(jnp.float32))
    temp = jnp.asarray(temperature, jnp.float32).reshape(1)

    # ---- specs --------------------------------------------------------------
    x_spec_kwargs = {}
    if x_buffers > 2:
        # Optional deeper pipelining if DMA gaps remain at large tiles.
        x_spec_kwargs = dict(pipeline_mode=pl.Buffered(x_buffers))
    x_spec = pl.BlockSpec((block_b, block_k), lambda i, k: (i, k),
                          **x_spec_kwargs)

    if w_resident:
        w_spec = pl.BlockSpec((Dp, NCp), lambda i, k: (0, 0))       # resident
    else:
        w_spec = pl.BlockSpec((block_k, NCp), lambda i, k: (k, 0))  # tiled

    grid_spec = pltpu.PrefetchScalarGridSpec(
        num_scalar_prefetch=0,
        grid=(n_b, n_k),                                       # reduction last
        in_specs=[
            pl.BlockSpec(memory_space=pltpu.SMEM),             # temperature
            x_spec,                                            # x tile
            w_spec,                                            # W
            pl.BlockSpec((1, NCp), lambda i, k: (0, 0)),       # bias (resident)
        ],
        out_specs=pl.BlockSpec((block_b, NCp), lambda i, k: (i, 0)),
    )

    # ---- VMEM budget / scoped limit -----------------------------------------
    ws_bytes = (2 * block_b * block_k * itemsize       # x (double-buffered)
                + 2 * w_rows * NCp * itemsize          # W
                + 2 * NCp * 4                          # bias
                + 2 * block_b * NCp * 4)               # output / accumulator
    if vmem_limit_bytes is None:
        # Raise v5e's 16 MiB default scoped window; stay under v7x's 64 MiB.
        vmem_limit_bytes = int(min(64 << 20, max(32 << 20, 2 * ws_bytes)))

    cost = pl.CostEstimate(
        flops=2 * Bp * Dp * NCp,
        transcendentals=0,
        bytes_accessed=(Bp * Dp * itemsize                            # x once
                        + Dp * NCp * itemsize * (1 if w_resident else n_b)
                        + NCp * 4                                     # bias
                        + Bp * NCp * 4),                              # output
    )

    kernel = functools.partial(_temp_scale_matmul_kernel, block_k=block_k)

    out_p = pl.pallas_call(
        kernel,
        out_shape=jax.ShapeDtypeStruct((Bp, NCp), jnp.float32),
        grid_spec=grid_spec,
        compiler_params=pltpu.CompilerParams(
            dimension_semantics=("parallel", "arbitrary"),
            vmem_limit_bytes=vmem_limit_bytes,
        ),
        cost_estimate=cost,
    )(temp, x_in, w_p, b_p)

    # Slice padded batch rows / class lanes back off.
    return out_p[:B, :NC]


if __name__ == "__main__":
    # Small shapes consistent with an image classifier input.
    B, C, H, W = 2, 4, 16, 16
    D = C * H * W
    NUM_CLASSES = 10

    key = jax.random.PRNGKey(0)
    kx, kw, kb = jax.random.split(key, 3)

    x = jax.random.normal(kx, (B, C, H, W), dtype=jnp.float32)
    # Deterministic synthetic "model" parameters (linear classifier).
    weight = jax.random.normal(kw, (D, NUM_CLASSES), dtype=jnp.float32) * 0.02
    bias = jax.random.normal(kb, (NUM_CLASSES,), dtype=jnp.float32) * 0.01
    # nn.Parameter(torch.ones(1) * 1.5)
    temperature = jnp.float32(1.5)

    out = model_with_temperature_forward(x, weight, bias, temperature)
    out = jax.block_until_ready(out)
    assert out.shape == (B, NUM_CLASSES)

    # Tight check vs a reference using the same bf16 input cast (f32 accum).
    x_c = x.reshape(B, D).astype(jnp.bfloat16).astype(jnp.float32)
    w_c = weight.astype(jnp.bfloat16).astype(jnp.float32)
    ref_bf16 = (x_c @ w_c + bias) / temperature
    assert jnp.allclose(out, ref_bf16, atol=1e-3, rtol=1e-3)

    # Looser check vs the pure-f32 reference (documents the bf16 tradeoff).
    ref_f32 = (x.reshape(B, D) @ weight + bias) / temperature
    assert jnp.allclose(out, ref_f32, atol=5e-2, rtol=5e-2)

    # TODO(synk): set_temperature / get_metrics use L-BFGS + ECE over a
    # validation loader (host-side optimization), not a kernel-able forward.
    print("KERNEL_OK")
</pallas_src>

<mosaic_0001>
module attributes {stable_mosaic.version = 11 : i64} {
  func.func @_temp_scale_matmul_kernel(%arg0: i32, %arg1: i32, %arg2: memref<1xf32, #tpu.memory_space<smem>>, %arg3: memref<8x1024xbf16, #tpu.memory_space<vmem>>, %arg4: memref<1024x128xbf16, #tpu.memory_space<vmem>>, %arg5: memref<1x128xf32, #tpu.memory_space<vmem>>, %arg6: memref<8x128xf32, #tpu.memory_space<vmem>>) attributes {dimension_semantics = [#tpu.dimension_semantics<parallel>, #tpu.dimension_semantics<arbitrary>], iteration_bounds = array<i64: 1, 1>, scalar_prefetch = 0 : i64, scratch_operands = 0 : i64, tpu.core_type = #tpu.core_type<tc>, window_params = [{transform_indices = @transform_0, window_bounds = array<i64: 1>}, {transform_indices = @transform_1, window_bounds = array<i64: 8, 1024>}, {pipeline_mode = #tpu.pipeline_mode<synchronous>, transform_indices = @transform_2, window_bounds = array<i64: 1024, 128>}, {pipeline_mode = #tpu.pipeline_mode<synchronous>, transform_indices = @transform_3, window_bounds = array<i64: 1, 128>}, {transform_indices = @transform_4, window_bounds = array<i64: 8, 128>}]} {
    %c0_i32 = arith.constant 0 : i32
    %0 = arith.cmpi eq, %arg1, %c0_i32 : i32
    %1 = arith.extui %0 : i1 to i32
    %c0_i32_0 = arith.constant 0 : i32
    %2 = arith.cmpi ne, %1, %c0_i32_0 : i32
    scf.if %2 {
      %c0_10 = arith.constant 0 : index
      %c0_11 = arith.constant 0 : index
      %12 = vector.load %arg5[%c0_10, %c0_11] : memref<1x128xf32, #tpu.memory_space<vmem>>, vector<1x128xf32>
      %13 = vector.shape_cast %12 : vector<1x128xf32> to vector<1x128xf32>
      %14 = vector.broadcast %13 : vector<1x128xf32> to vector<8x128xf32>
      %c0_12 = arith.constant 0 : index
      %c0_13 = arith.constant 0 : index
      %15 = vector.load %arg6[%c0_12, %c0_13] : memref<8x128xf32, #tpu.memory_space<vmem>>, vector<8x128xf32>
      tpu.vector_store %arg6[%c0_12, %c0_13], %14 {strides = array<i32>} : memref<8x128xf32, #tpu.memory_space<vmem>>, vector<8x128xf32>,
    } else {
    }
    %c0 = arith.constant 0 : index
    %c0_1 = arith.constant 0 : index
    %3 = vector.load %arg4[%c0, %c0_1] : memref<1024x128xbf16, #tpu.memory_space<vmem>>, vector<1024x128xbf16>
    %c0_2 = arith.constant 0 : index
    %c0_3 = arith.constant 0 : index
    %4 = vector.load %arg6[%c0_2, %c0_3] : memref<8x128xf32, #tpu.memory_space<vmem>>, vector<8x128xf32>
    %c0_4 = arith.constant 0 : index
    %c0_5 = arith.constant 0 : index
    %5 = vector.load %arg3[%c0_4, %c0_5] : memref<8x1024xbf16, #tpu.memory_space<vmem>>, vector<8x1024xbf16>
    %cst = arith.constant dense<0.000000e+00> : vector<8x128xf32>
    %6 = tpu.matmul %5, %3, %cst {dimension_numbers = #tpu.dot_dimension_numbers<[1], [0], [0], [1], [0, 0, 1, 1], [], []>} : vector<8x1024xbf16>, vector<1024x128xbf16>, vector<8x128xf32> -> vector<8x128xf32>
    %7 = arith.addf %4, %6 : vector<8x128xf32>
    %c0_6 = arith.constant 0 : index
    %c0_7 = arith.constant 0 : index
    %8 = vector.load %arg6[%c0_6, %c0_7] : memref<8x128xf32, #tpu.memory_space<vmem>>, vector<8x128xf32>
    tpu.vector_store %arg6[%c0_6, %c0_7], %7 {strides = array<i32>} : memref<8x128xf32, #tpu.memory_space<vmem>>, vector<8x128xf32>,
    %c0_i32_8 = arith.constant 0 : i32
    %9 = arith.cmpi eq, %arg1, %c0_i32_8 : i32
    %10 = arith.extui %9 : i1 to i32
    %c0_i32_9 = arith.constant 0 : i32
    %11 = arith.cmpi ne, %10, %c0_i32_9 : i32
    scf.if %11 {
      %c0_10 = arith.constant 0 : index
      %12 = memref.load %arg2[%c0_10] : memref<1xf32, #tpu.memory_space<smem>>
      %cst_11 = arith.constant 1.000000e+00 : f32
      %13 = arith.divf %cst_11, %12 : f32
      %c0_12 = arith.constant 0 : index
      %c0_13 = arith.constant 0 : index
      %14 = vector.load %arg6[%c0_12, %c0_13] : memref<8x128xf32, #tpu.memory_space<vmem>>, vector<8x128xf32>
      %15 = vector.broadcast %13 : f32 to vector<8x128xf32>
      %16 = arith.mulf %14, %15 : vector<8x128xf32>
      %c0_14 = arith.constant 0 : index
      %c0_15 = arith.constant 0 : index
      %17 = vector.load %arg6[%c0_14, %c0_15] : memref<8x128xf32, #tpu.memory_space<vmem>>, vector<8x128xf32>
      tpu.vector_store %arg6[%c0_14, %c0_15], %16 {strides = array<i32>} : memref<8x128xf32, #tpu.memory_space<vmem>>, vector<8x128xf32>,
    } else {
    }
    return
  }
  func.func @transform_0(%arg0: i32, %arg1: i32) -> i32 {
    %c0_i32 = arith.constant 0 : i32
    %c0_i32_0 = arith.constant 0 : i32
    return %c0_i32 : i32
  }
  func.func @transform_1(%arg0: i32, %arg1: i32) -> (i32, i32) {
    %c0_i32 = arith.constant 0 : i32
    return %arg0, %arg1 : i32, i32
  }
  func.func @transform_2(%arg0: i32, %arg1: i32) -> (i32, i32) {
    %c0_i32 = arith.constant 0 : i32
    %c0_i32_0 = arith.constant 0 : i32
    %c0_i32_1 = arith.constant 0 : i32
    return %c0_i32, %c0_i32_0 : i32, i32
  }
  func.func @transform_3(%arg0: i32, %arg1: i32) -> (i32, i32) {
    %c0_i32 = arith.constant 0 : i32
    %c0_i32_0 = arith.constant 0 : i32
    %c0_i32_1 = arith.constant 0 : i32
    return %c0_i32, %c0_i32_0 : i32, i32
  }
  func.func @transform_4(%arg0: i32, %arg1: i32) -> (i32, i32) {
    %c0_i32 = arith.constant 0 : i32
    %c0_i32_0 = arith.constant 0 : i32
    return %arg0, %c0_i32 : i32, i32
  }
}

</mosaic_0001>

<bundles_post_ra>
// kernel: tpu_custom_call.1
= control target key start
LH: loop header
LB: loop body
LE: loop exit
PB: predicated region body
PF: predicated region fallthrough
CT: control target
= control target key end

     0   :  { %10 = vsyncpa [#allocation4], 0  ;;  %s1204_s0 = inlined_call_operand.<no memory space> [shape: f32[1], index: 0, kind: input, shape index: {}]   ;;  %s1205_s1 = inlined_call_operand.hbm [shape: bf16[8,1024], index: 1, kind: input, shape index: {}]   ;;  %s1206_s2 = inlined_call_operand.hbm [shape: bf16[1024,128], index: 2, kind: input, shape index: {}]   ;;  %s1207_s3 = inlined_call_operand.vmem [shape: f32[1,128], index: 3, kind: input, shape index: {}]   ;;  %s1208_s4 = inlined_call_operand.hbm [shape: f32[8,128], index: 4, kind: output, shape index: {}]  }
   0x1   :  { %11 = vsyncpa [#allocation7], 0 }
   0x2   :  { %12 = vsyncpa [#allocation5], 0  ;;  %s20_s17 = sshll.u32 %s1205_s1, 4  ;;  %s1159_s18 = smov [#allocation3]   ;;  %s21_s17 = int_to_ptr.hbm [resolvable:$true] %s20_s17 }
   0x3   :  { %s22_s19 = sshll.u32 %s1159_s18, 4  ;;  %s30_s22 = sshll.u32 %s1206_s2, 4  ;;  %s23_s19 = int_to_ptr.vmem [resolvable:$true] %s22_s19  ;;  %s31_s22 = int_to_ptr.hbm [resolvable:$true] %s30_s22 }
   0x4   :  { %25 = dma.hbm_to_vmem [thread:$0]  %s21_s17, 512, %s23_s19, [#allocation4]  }
   0x5   :  { %s1160_s23 = smov [#allocation6]   ;;  %s1161_s25 = smov 64  }
   0x6   :  { %s32_s24 = sshll.u32 %s1160_s23, 4  ;;  %s1162_s26 = smov 4   ;;  %s33_s24 = int_to_ptr.vmem [resolvable:$true] %s32_s24 }
   0x7   :  { %38 = dma.hbm_to_vmem [thread:$0]  %s31_s22, 8192, %s33_s24, [#allocation7], %s1161_s25, %s1161_s25, %s1162_s26  }
   0x8   :  { %1153 = dma.done.wait [#allocation4], 512  }
   0x9   :  { %1154 = vsyncadd [#allocation4], 4294966784 }
   0xa   :  { %1155 = dma.done.wait [#allocation7], 8192  }
   0xb   :  { %1156 = vsyncadd [#allocation7], 4294959104  ;;  %v1014_v0 = vld [vmem:[#allocation6 + $0x38] sm:$0xff]  ;;  %v1013_v4 = vld [vmem:[#allocation6 + $0x30] sm:$0xff]  ;;  %v713_v48 = vstv %s1204_s0  ;;  %s1163_s29 = smov [#allocation8]   ;;  %s740_s7 = sshll.u32 %s1208_s4, 4  ;;  %s741_s7 = int_to_ptr.hbm [resolvable:$true] %s740_s7 }
   0xc   :  { %v1022_v1 = vld [vmem:[#allocation6 + $0x78] sm:$0xff]  ;;  %603 = vmatpush.bf16.msra.mxu0 %v1014_v0  ;;  %v1021_v5 = vld [vmem:[#allocation6 + $0x70] sm:$0xff]  ;;  %v1012_v8 = vld [vmem:[#allocation6 + $0x28] sm:$0xff]  ;;  %1079 = vrcp.f32 %v713_v48  ;;  %v725_v61 = vand.u32 2147483648, %v713_v48  ;;  %vm719_vm0 = vweird.f32 %v713_v48  ;;  %v723_v63 = vand.u32 2147483647, %v713_v48 }
   0xd   :  { %v1030_v2 = vld [vmem:[#allocation6 + $0xb8] sm:$0xff]  ;;  %616 = vmatpush.bf16.msra.mxu1 %v1022_v1  ;;  %v1029_v6 = vld [vmem:[#allocation6 + $0xb0] sm:$0xff]  ;;  %v1020_v9 = vld [vmem:[#allocation6 + $0x68] sm:$0xff]  ;;  %s738_s30 = sshll.u32 %s1163_s29, 4  ;;  %s739_s30 = int_to_ptr.vmem [resolvable:$true] %s738_s30 }
   0xe   :  { %v1038_v3 = vld [vmem:[#allocation6 + $0xf8] sm:$0xff]  ;;  %629 = vmatpush.bf16.msra.mxu2 %v1030_v2  ;;  %v1037_v7 = vld [vmem:[#allocation6 + $0xf0] sm:$0xff]  ;;  %v1028_v10 = vld [vmem:[#allocation6 + $0xa8] sm:$0xff]  ;;  %vm724_vm3 = vcmp.eq.f32.partialorder %v723_v63, 8.507059e+37 }
   0xf   :  { %642 = vmatpush.bf16.msra.mxu3 %v1038_v3  ;;  %v1036_v11 = vld [vmem:[#allocation6 + $0xe8] sm:$0xff]  ;;  %v1011_v12 = vld [vmem:[#allocation6 + $0x20] sm:$0xff]  ;;  %v1010_v16 = vld [vmem:[#allocation6 + $0x18] sm:$0xff] }
  0x10   :  { %604 = vmatpush.bf16.msra.mxu0 %v1013_v4  ;;  %v1019_v13 = vld [vmem:[#allocation6 + $0x60] sm:$0xff]  ;;  %v1018_v17 = vld [vmem:[#allocation6 + $0x58] sm:$0xff]  ;;  %v1009_v20 = vld [vmem:[#allocation6 + $0x10] sm:$0xff] }
  0x11   :  { %617 = vmatpush.bf16.msra.mxu1 %v1021_v5  ;;  %v1027_v14 = vld [vmem:[#allocation6 + $0xa0] sm:$0xff]  ;;  %v1026_v18 = vld [vmem:[#allocation6 + $0x98] sm:$0xff]  ;;  %v1017_v21 = vld [vmem:[#allocation6 + $0x50] sm:$0xff]  ;;  %v726_v5 = vor.u32 1.1754944e-38, %v725_v61 }
  0x12   :  { %630 = vmatpush.bf16.msra.mxu2 %v1029_v6  ;;  %v1035_v15 = vld [vmem:[#allocation6 + $0xe0] sm:$0xff]  ;;  %v1034_v19 = vld [vmem:[#allocation6 + $0xd8] sm:$0xff]  ;;  %v1025_v22 = vld [vmem:[#allocation6 + $0x90] sm:$0xff]  ;;  %v1080_v55 = vpop.eup %1079 }
  0x13   :  { %643 = vmatpush.bf16.msra.mxu3 %v1037_v7  ;;  %v1033_v23 = vld [vmem:[#allocation6 + $0xd0] sm:$0xff]  ;;  %v1008_v24 = vld [vmem:[#allocation6 + $0x8] sm:$0xff]  ;;  %v187_v29 = vld [vmem:[#allocation3] sm:$0xff]  ;;  %v715_v58 = vmul.f32 %v1080_v55, %v713_v48  ;;  %vm720_vm1 = vweird.f32 %v1080_v55 }
  0x14   :  { %605 = vmatpush.bf16.msra.mxu0 %v1012_v8  ;;  %v1016_v25 = vld [vmem:[#allocation6 + $0x48] sm:$0xff]  ;;  %v1007_v30 = vld [vmem:[#allocation6] sm:$0xff]  ;;  %v195_v33 = vunpack.c.l.b16 %v187_v29  ;;  %v196_v37 = vunpack.c.h.b16 %v187_v29  ;;  %v1046_v38 = vld [vmem:[#allocation6 + $0x138] sm:$0xff] }
  0x15   :  { %618 = vmatpush.bf16.msra.mxu1 %v1020_v9  ;;  %v1024_v26 = vld [vmem:[#allocation6 + $0x88] sm:$0xff]  ;;  %v1015_v31 = vld [vmem:[#allocation6 + $0x40] sm:$0xff]  ;;  %v1054_v39 = vld [vmem:[#allocation6 + $0x178] sm:$0xff]  ;;  %v716_v62 = vsub.f32 1.0, %v715_v58 }
  0x16   :  { %631 = vmatpush.bf16.msra.mxu2 %v1028_v10  ;;  %v1032_v27 = vld [vmem:[#allocation6 + $0xc8] sm:$0xff]  ;;  %v1023_v34 = vld [vmem:[#allocation6 + $0x80] sm:$0xff]  ;;  %v1062_v40 = vld [vmem:[#allocation6 + $0x1b8] sm:$0xff]  ;;  %v203_v43 = vpack.c.b16 %v195_v33, %v195_v33  ;;  %v204_v45 = vpack.c.b16 %v196_v37, %v196_v37 }
  0x17   :  { %644 = vmatpush.bf16.msra.mxu3 %v1036_v11  ;;  %v188_v28 = vld [vmem:[#allocation3 + $0x8] sm:$0xff]  ;;  %v1031_v35 = vld [vmem:[#allocation6 + $0xc0] sm:$0xff]  ;;  %v1070_v41 = vld [vmem:[#allocation6 + $0x1f8] sm:$0xff]  ;;  %v717_v2 = vmul.f32 %v1080_v55, %v716_v62 }
  0x18   :  { %606 = vmatpush.bf16.msra.mxu0 %v1011_v12  ;;  %v197_v32 = vunpack.c.l.b16 %v188_v28  ;;  %v198_v36 = vunpack.c.h.b16 %v188_v28  ;;  %v1045_v46 = vld [vmem:[#allocation6 + $0x130] sm:$0xff]  ;;  %v1044_v51 = vld [vmem:[#allocation6 + $0x128] sm:$0xff]  ;;  %v1043_v56 = vld [vmem:[#allocation6 + $0x120] sm:$0xff] }
  0x19   :  { %619 = vmatpush.bf16.msra.mxu1 %v1019_v13  ;;  %v1053_v47 = vld [vmem:[#allocation6 + $0x170] sm:$0xff]  ;;  %v1052_v52 = vld [vmem:[#allocation6 + $0x168] sm:$0xff]  ;;  %v1051_v57 = vld [vmem:[#allocation6 + $0x160] sm:$0xff]  ;;  %v718_v6 = vadd.f32 %v1080_v55, %v717_v2 }
  0x1a   :  { %632 = vmatpush.bf16.msra.mxu2 %v1027_v14  ;;  %v205_v42 = vpack.c.b16 %v197_v32, %v197_v32  ;;  %v206_v44 = vpack.c.b16 %v198_v36, %v198_v36  ;;  %v1061_v49 = vld [vmem:[#allocation6 + $0x1b0] sm:$0xff]  ;;  %v1060_v53 = vld [vmem:[#allocation6 + $0x1a8] sm:$0xff]  ;;  %v1059_v59 = vld [vmem:[#allocation6 + $0x1a0] sm:$0xff] }
  0x1b   :  { %645 = vmatpush.bf16.msra.mxu3 %v1035_v15  ;;  %v1069_v50 = vld [vmem:[#allocation6 + $0x1f0] sm:$0xff]  ;;  %v1068_v54 = vld [vmem:[#allocation6 + $0x1e8] sm:$0xff]  ;;  %v1067_v60 = vld [vmem:[#allocation6 + $0x1e0] sm:$0xff] }
  0x1c   :  { %607 = vmatpush.bf16.msra.mxu0 %v1010_v16  ;;  %v1042_v0 = vld [vmem:[#allocation6 + $0x118] sm:$0xff]  ;;  %vm721_vm2 = vmor %vm719_vm0, %vm720_vm1  ;;  %v1041_v7 = vld [vmem:[#allocation6 + $0x110] sm:$0xff] }
  0x1d   :  { %620 = vmatpush.bf16.msra.mxu1 %v1018_v17  ;;  %v1050_v1 = vld [vmem:[#allocation6 + $0x158] sm:$0xff]  ;;  %v1049_v8 = vld [vmem:[#allocation6 + $0x150] sm:$0xff]  ;;  %v722_v9 = vsel %vm721_vm2, %v1080_v55, %v718_v6  ;;  %v1040_v13 = vld [vmem:[#allocation6 + $0x108] sm:$0xff] }
  0x1e   :  { %633 = vmatpush.bf16.msra.mxu2 %v1026_v18  ;;  %v1058_v3 = vld [vmem:[#allocation6 + $0x198] sm:$0xff]  ;;  %v1057_v10 = vld [vmem:[#allocation6 + $0x190] sm:$0xff]  ;;  %v727_v12 = vsel %vm724_vm3, %v726_v5, %v722_v9  ;;  %v1048_v14 = vld [vmem:[#allocation6 + $0x148] sm:$0xff] }
  0x1f   :  { %646 = vmatpush.bf16.msra.mxu3 %v1034_v19  ;;  %v1066_v4 = vld [vmem:[#allocation6 + $0x1d8] sm:$0xff]  ;;  %v1065_v11 = vld [vmem:[#allocation6 + $0x1d0] sm:$0xff]  ;;  %1071 = vpush %v727_v12  ;;  %v1056_v16 = vld [vmem:[#allocation6 + $0x188] sm:$0xff] }
  0x20   :  { %608 = vmatpush.bf16.msra.mxu0 %v1009_v20  ;;  %v189_v15 = vld [vmem:[#allocation3 + $0x10] sm:$0xff]  ;;  %v1064_v17 = vld [vmem:[#allocation6 + $0x1c8] sm:$0xff]  ;;  %v190_v18 = vld [vmem:[#allocation3 + $0x18] sm:$0xff] }
  0x21   :  { %621 = vmatpush.bf16.msra.mxu1 %v1017_v21  ;;  %v199_v19 = vunpack.c.l.b16 %v189_v15  ;;  %v200_v20 = vunpack.c.h.b16 %v189_v15  ;;  %v1039_v21 = vld [vmem:[#allocation6 + $0x100] sm:$0xff] }
  0x22   :  { %634 = vmatpush.bf16.msra.mxu2 %v1025_v22  ;;  %v1047_v22 = vld [vmem:[#allocation6 + $0x140] sm:$0xff] }
  0x23   :  { %647 = vmatpush.bf16.msra.mxu3 %v1033_v23  ;;  %v201_v23 = vunpack.c.l.b16 %v190_v18  ;;  %v208_v28 = vpack.c.b16 %v200_v20, %v200_v20 }
  0x24   :  { %609 = vmatpush.bf16.msra.mxu0 %v1008_v24  ;;  %v202_v24 = vunpack.c.h.b16 %v190_v18 }
  0x25   :  { %622 = vmatpush.bf16.msra.mxu1 %v1016_v25  ;;  %v1055_v25 = vld [vmem:[#allocation6 + $0x180] sm:$0xff]  ;;  %v209_v29 = vpack.c.b16 %v201_v23, %v201_v23 }
  0x26   :  { %635 = vmatpush.bf16.msra.mxu2 %v1024_v26  ;;  %v1063_v26 = vld [vmem:[#allocation6 + $0x1c0] sm:$0xff] }
  0x27   :  { %648 = vmatpush.bf16.msra.mxu3 %v1032_v27  ;;  %v207_v27 = vpack.c.b16 %v199_v19, %v199_v19 }
  0x28   :  { %610 = vmatpush.bf16.msra.mxu0 %v1007_v30  ;;  %v210_v30 = vpack.c.b16 %v202_v24, %v202_v24 }
  0x29   :  { %623 = vmatpush.bf16.msra.mxu1 %v1015_v31 }
  0x2a   :  { %636 = vmatpush.bf16.msra.mxu2 %v1023_v34 }
  0x2b   :  { %649 = vmatpush.bf16.msra.mxu3 %v1031_v35  ;;  %611 = vmatmul.bf16.vlgmr.msra.gmra.mxu0 %v203_v43 }
  0x2c   :  { %655 = vmatpush.bf16.msrb.mxu0 %v1046_v38  ;;  %624 = vmatmul.bf16.vlgmr.msra.gmra.mxu1 %v204_v45 }
  0x2d   :  { %668 = vmatpush.bf16.msrb.mxu1 %v1054_v39  ;;  %637 = vmatmul.bf16.vlgmr.msra.gmra.mxu2 %v205_v42 }
  0x2e   :  { %681 = vmatpush.bf16.msrb.mxu2 %v1062_v40  ;;  %650 = vmatmul.bf16.vlgmr.msra.gmra.mxu3 %v206_v44 }
  0x2f   :  { %694 = vmatpush.bf16.msrb.mxu3 %v1070_v41 }
  0x30   :  { %656 = vmatpush.bf16.msrb.mxu0 %v1045_v46 }
  0x31   :  { %669 = vmatpush.bf16.msrb.mxu1 %v1053_v47 }
  0x32   :  { %682 = vmatpush.bf16.msrb.mxu2 %v1061_v49  ;;  %v1078_v49 = vld [vmem:[%s1207_s3] ss:$0 sm:$0xff] }
  0x33   :  { %695 = vmatpush.bf16.msrb.mxu3 %v1069_v50 }
  0x34   :  { %657 = vmatpush.bf16.msrb.mxu0 %v1044_v51 }
  0x35   :  { %670 = vmatpush.bf16.msrb.mxu1 %v1052_v52 }
  0x36   :  { %683 = vmatpush.bf16.msrb.mxu2 %v1060_v53 }
  0x37   :  { %696 = vmatpush.bf16.msrb.mxu3 %v1068_v54 }
  0x38   :  { %658 = vmatpush.bf16.msrb.mxu0 %v1043_v56 }
  0x39   :  { %671 = vmatpush.bf16.msrb.mxu1 %v1051_v57 }
  0x3a   :  { %684 = vmatpush.bf16.msrb.mxu2 %v1059_v59 }
  0x3b   :  { %697 = vmatpush.bf16.msrb.mxu3 %v1067_v60 }
  0x3c   :  { %659 = vmatpush.bf16.msrb.mxu0 %v1042_v0 }
  0x3d   :  { %672 = vmatpush.bf16.msrb.mxu1 %v1050_v1 }
  0x3e   :  { %685 = vmatpush.bf16.msrb.mxu2 %v1058_v3 }
  0x3f   :  { %698 = vmatpush.bf16.msrb.mxu3 %v1066_v4 }
  0x40   :  { %660 = vmatpush.bf16.msrb.mxu0 %v1041_v7 }
  0x41   :  { %673 = vmatpush.bf16.msrb.mxu1 %v1049_v8 }
  0x42   :  { %686 = vmatpush.bf16.msrb.mxu2 %v1057_v10 }
  0x43   :  { %699 = vmatpush.bf16.msrb.mxu3 %v1065_v11 }
  0x44   :  { %661 = vmatpush.bf16.msrb.mxu0 %v1040_v13 }
  0x45   :  { %674 = vmatpush.bf16.msrb.mxu1 %v1048_v14 }
  0x46   :  { %687 = vmatpush.bf16.msrb.mxu2 %v1056_v16 }
  0x47   :  { %700 = vmatpush.bf16.msrb.mxu3 %v1064_v17 }
  0x48   :  { %662 = vmatpush.bf16.msrb.mxu0 %v1039_v21 }
  0x49   :  { %675 = vmatpush.bf16.msrb.mxu1 %v1047_v22 }
  0x4a   :  { %688 = vmatpush.bf16.msrb.mxu2 %v1055_v25 }
  0x4b   :  { %701 = vmatpush.bf16.msrb.mxu3 %v1063_v26  ;;  %663 = vmatmul.bf16.vlgmr.msrb.gmra.mxu0 %v207_v27 }
  0x4c   :  { %676 = vmatmul.bf16.vlgmr.msrb.gmra.mxu1 %v208_v28 }
  0x4d   :  { %689 = vmatmul.bf16.vlgmr.msrb.gmra.mxu2 %v209_v29 }
  0x4e   :  { %702 = vmatmul.bf16.vlgmr.msrb.gmra.mxu3 %v210_v30 }
  0x50   :  { %s1072_s28 = spop %1071 }
  0x51   :  { %v730_v53 = vstv %s1072_s28 }
  0xa8   :  { %v612_v31 = vpop.f32.mrf.mxu0 }
  0xa9   :  { %v625_v32 = vpop.f32.mrf.mxu1 }
  0xaa   :  { %v626_v39 = vadd.f32 %v625_v32, %v612_v31 }
  0xb0   :  { %v638_v33 = vpop.f32.mrf.mxu2  ;;  %v614_v35 = vpop.f32.mrf.mxu0 }
  0xb1   :  { %v651_v34 = vpop.f32.mrf.mxu3  ;;  %v627_v36 = vpop.f32.mrf.mxu1  ;;  %v639_v40 = vadd.f32 %v638_v33, %v626_v39 }
  0xb3   :  { %v652_v41 = vadd.f32 %v651_v34, %v639_v40 }
  0xb8   :  { %v640_v37 = vpop.f32.mrf.mxu2 }
  0xb9   :  { %v653_v38 = vpop.f32.mrf.mxu3 }
  0xc8   :  { %v664_v42 = vpop.f32.mrf.mxu0 }
  0xc9   :  { %v677_v43 = vpop.f32.mrf.mxu1  ;;  %v665_v44 = vadd.f32 %v664_v42, %v652_v41 }
  0xcb   :  { %v678_v45 = vadd.f32 %v677_v43, %v665_v44 }
  0xd0   :  { %v690_v46 = vpop.f32.mrf.mxu2  ;;  %v666_v50 = vpop.f32.mrf.mxu0 }
  0xd1   :  { %v703_v47 = vpop.f32.mrf.mxu3  ;;  %v691_v48 = vadd.f32 %v690_v46, %v678_v45  ;;  %v679_v51 = vpop.f32.mrf.mxu1 }
  0xd3   :  { %v704_v52 = vadd.f32 %v703_v47, %v691_v48 }
  0xd5   :  { %v707_v54 = vadd.f32 %v1078_v49, %v704_v52 }
  0xd7   :  { %v731_v55 = vmul.f32 %v730_v53, %v707_v54 }
  0xd8   :  { %v692_v56 = vpop.f32.mrf.mxu2 }
  0xd9   :  { %v705_v57 = vpop.f32.mrf.mxu3  ;;  %732 = vst [vmem:[#allocation8] sm:$0xff] %v731_v55 }
  0xda   :  { %743 = dma.vmem_to_hbm [thread:$0]  %s739_s30, 128, %s741_s7, [#allocation5]  }
  0xdb   :  { %1157 = dma.done.wait [#allocation5], 128  }
  0xdc   :  { %1158 = vsyncadd [#allocation5], 4294967168 }
  0xdd   :  { %748 = vsyncpa [#allocation4], 1 }
  0xde   :  { %749 = vsyncpa [#allocation7], 1 }
  0xdf   :  { %750 = vsyncpa [#allocation5], 1 }

</bundles_post_ra>
